<compile_context>
chip_gen: v5e
topology: v5e:2x2
jax: 0.10.0
libtpu: 0.0.40
codegen_flags: <defaults>
</compile_context>

<pallas_src>
import functools
import math
import random

import jax
import jax.numpy as jnp
import numpy as np
from jax import lax
from jax.experimental import pallas as pl
from jax.experimental.pallas import tpu as pltpu


def _burn_kernel(params_ref, img_ref, out_ref, *,
                 num_spots, h, w, ew_min, ew_scale):
    """params_ref: SMEM f32[1 + 4*num_spots] =
           [burn_intensity, (spot_x, spot_y, 1/radius, log(intensity)) * N]
       img_ref / out_ref: VMEM f32[3, tile_h, Wp]  (one row-tile of the image)
    """
    _, th, wp = img_ref.shape
    row0 = (pl.program_id(0) * th).astype(jnp.float32)   # element row offset

    # linspace(-1, 1, n) step as static Python floats (no vector divides)
    y_step = 2.0 / (h - 1) if h > 1 else 0.0
    x_step = 2.0 / (w - 1) if w > 1 else 0.0

    yi = lax.broadcasted_iota(jnp.int32, (th, wp), 0).astype(jnp.float32)
    xi = lax.broadcasted_iota(jnp.int32, (th, wp), 1).astype(jnp.float32)
    y = (yi + row0) * y_step - 1.0
    x = xi * x_step - 1.0

    dist = jnp.sqrt(x * x + y * y)

    # Edge weight with ANALYTIC min/max normalization (scale precomputed):
    #   (exp(2*(dist-0.7)) - ew_min) * (1 / (ew_max - ew_min))
    mask = (jnp.exp(2.0 * (dist - 0.7)) - ew_min) * ew_scale

    # Burnt spots: max over exponentially decaying blobs.
    for s in range(num_spots):
        sx = params_ref[1 + 4 * s + 0]
        sy = params_ref[1 + 4 * s + 1]
        inv_r = params_ref[1 + 4 * s + 2]
        log_si = params_ref[1 + 4 * s + 3]
        dx = x - sx
        dy = y - sy
        sd = jnp.sqrt(dx * dx + dy * dy)
        mask = jnp.maximum(mask, jnp.exp(log_si - sd * inv_r))

    bm = mask * params_ref[0]            # burn_mask = max(edge, spots) * intensity

    # Simplified blend: R keeps 80% under burn, G/B keep 50%.
    s_r = 1.0 - 0.2 * bm
    s_gb = 1.0 - 0.5 * bm
    out_ref[0] = img_ref[0] * s_r
    out_ref[1] = img_ref[1] * s_gb
    out_ref[2] = img_ref[2] * s_gb


def pizza_burning_effect(img, burn_intensity, spot_params, *, tile_h=None):
    """img: f32[3, H, W]; burn_intensity: python float;
       spot_params: f32[num_spots, 4] rows of (spot_x, spot_y, radius, intensity)."""
    img = jnp.asarray(img, jnp.float32)
    C, H, W = img.shape
    assert C == 3, "expects CHW image with 3 channels"
    spot_params = np.asarray(spot_params, np.float64).reshape(-1, 4)
    num_spots = int(spot_params.shape[0])

    # ---- scalar params (SMEM): burn_intensity + (sx, sy, 1/r, log(si)) per spot
    packed = np.empty((1 + 4 * num_spots,), np.float32)
    packed[0] = burn_intensity
    for s, (sx, sy, sr, si) in enumerate(spot_params):
        packed[1 + 4 * s: 1 + 4 * s + 4] = (sx, sy, 1.0 / sr, math.log(si))
    params = jnp.asarray(packed)

    # ---- analytic edge-weight extrema (exp is monotone in radial distance).
    # linspace(-1,1,n): min |coord| = 0 for odd n, 1/(n-1) for even n; max = 1.
    def _axis_abs_extrema(n):
        if n <= 1:
            return 1.0, 1.0            # linspace(-1, 1, 1) == [-1]
        return (0.0 if (n % 2 == 1) else 1.0 / (n - 1)), 1.0

    ymn, ymx = _axis_abs_extrema(H)
    xmn, xmx = _axis_abs_extrema(W)
    ew_min = math.exp(2.0 * (math.hypot(xmn, ymn) - 0.7))
    ew_max = math.exp(2.0 * (math.hypot(xmx, ymx) - 0.7))
    denom = ew_max - ew_min
    ew_scale = 1.0 / denom if denom > 0.0 else 0.0   # guard degenerate 1x1 image

    # ---- pad W to a multiple of 128 so output stores are lane-dense.
    Wp = ((W + 127) // 128) * 128
    img_p = jnp.pad(img, ((0, 0), (0, 0), (0, Wp - W))) if Wp != W else img

    # ---- tile over H: multiple of 8, block (3, tile_h, Wp) kept around ~2 MiB
    # so double-buffered in+out blocks stay far under v7x's 32 MiB scoped VMEM.
    if tile_h is None:
        target = (2 * 1024 * 1024) // (3 * 4 * Wp)
        tile_h = max(8, (target // 8) * 8)
    if tile_h >= H:
        tile_h = H                      # full-H block (any H allowed)
    elif tile_h % 8 != 0:
        tile_h = max(8, (tile_h // 8) * 8)
    grid = (pl.cdiv(H, tile_h),)

    kernel = functools.partial(
        _burn_kernel, num_spots=num_spots, h=H, w=W,
        ew_min=ew_min, ew_scale=ew_scale)

    out = pl.pallas_call(
        kernel,
        out_shape=jax.ShapeDtypeStruct((C, H, Wp), jnp.float32),
        grid=grid,
        in_specs=[
            pl.BlockSpec(memory_space=pltpu.MemorySpace.SMEM),      # scalar params
            pl.BlockSpec((C, tile_h, Wp), lambda i: (0, i, 0)),     # image row tile
        ],
        out_specs=pl.BlockSpec((C, tile_h, Wp), lambda i: (0, i, 0)),
        compiler_params=pltpu.CompilerParams(
            dimension_semantics=("parallel",)),                     # shards over 2 TCs on v7x
    )(params, img_p)

    return out[:, :, :W] if Wp != W else out


def _reference(img, burn_intensity, spot_params):
    """Pure-JAX reference mirroring the PyTorch forward (numeric min/max)."""
    _, h, w = img.shape
    y_coords, x_coords = jnp.meshgrid(
        jnp.linspace(-1.0, 1.0, h), jnp.linspace(-1.0, 1.0, w), indexing="ij"
    )
    dist = jnp.sqrt(x_coords**2 + y_coords**2)
    edge_weight = jnp.exp(2.0 * (dist - 0.7))
    edge_weight = (edge_weight - edge_weight.min()) / (edge_weight.max() - edge_weight.min())
    spots_mask = jnp.zeros_like(dist)
    for sx, sy, sr, si in np.asarray(spot_params):
        spot_dist = jnp.sqrt((x_coords - sx) ** 2 + (y_coords - sy) ** 2)
        spots_mask = jnp.maximum(spots_mask, jnp.exp(-spot_dist / sr) * si)
    burn_mask = jnp.maximum(edge_weight, spots_mask) * burn_intensity
    burn_mask = burn_mask[None].repeat(3, axis=0)
    darkening = jnp.stack([img[0] * 0.8, img[1] * 0.5, img[2] * 0.5])
    return img * (1.0 - burn_mask) + darkening * burn_mask


if __name__ == "__main__":
    # Deterministic "random" forward-pass parameters (the module draws these
    # per call with Python's random; done host-side here).
    rng = random.Random(0)
    burn_intensity = rng.uniform(0.2, 0.8)
    num_spots = rng.randint(3, 8)
    spot_params = np.array(
        [
            [rng.uniform(-1, 1), rng.uniform(-1, 1),
             rng.uniform(0.05, 0.2), rng.uniform(0.5, 1.0)]
            for _ in range(num_spots)
        ],
        dtype=np.float32,
    )

    # Deterministic example image: (C=3, H=64, W=128) float32 in [0, 1].
    key = jax.random.PRNGKey(0)
    img = jax.random.uniform(key, (3, 64, 128), dtype=jnp.float32)

    # tile_h=16 -> grid of 4 row-tiles: exercises the pipelined / tiled path.
    out = pizza_burning_effect(img, burn_intensity, spot_params, tile_h=16)
    out = jax.block_until_ready(out)

    ref = _reference(img, burn_intensity, spot_params)
    np.testing.assert_allclose(np.asarray(out), np.asarray(ref), rtol=1e-5, atol=1e-5)

    print("KERNEL_OK")
</pallas_src>

<mosaic_0001>
module attributes {stable_mosaic.version = 11 : i64} {
  func.func @_burn_kernel(%arg0: i32, %arg1: memref<25xf32, #tpu.memory_space<smem>>, %arg2: memref<3x16x128xf32, #tpu.memory_space<vmem>>, %arg3: memref<3x16x128xf32, #tpu.memory_space<vmem>>) attributes {dimension_semantics = [#tpu.dimension_semantics<parallel>], iteration_bounds = array<i64: 4>, scalar_prefetch = 0 : i64, scratch_operands = 0 : i64, tpu.core_type = #tpu.core_type<tc>, window_params = [{transform_indices = @transform_0, window_bounds = array<i64: 25>}, {transform_indices = @transform_1, window_bounds = array<i64: 3, 16, 128>}, {transform_indices = @transform_2, window_bounds = array<i64: 3, 16, 128>}]} {
    %c16_i32 = arith.constant 16 : i32
    %0 = arith.muli %arg0, %c16_i32 : i32
    %1 = arith.sitofp %0 : i32 to f32
    %2 = tpu.iota {dimensions = array<i32: 0>} : vector<16x128xi32>
    %3 = arith.sitofp %2 : vector<16x128xi32> to vector<16x128xf32>
    %4 = tpu.iota {dimensions = array<i32: 1>} : vector<16x128xi32>
    %5 = arith.sitofp %4 : vector<16x128xi32> to vector<16x128xf32>
    %6 = vector.broadcast %1 : f32 to vector<16x128xf32>
    %7 = arith.addf %3, %6 : vector<16x128xf32>
    %cst = arith.constant 0.0317460336 : f32
    %8 = vector.broadcast %cst : f32 to vector<16x128xf32>
    %9 = arith.mulf %7, %8 : vector<16x128xf32>
    %cst_0 = arith.constant 1.000000e+00 : f32
    %10 = vector.broadcast %cst_0 : f32 to vector<16x128xf32>
    %11 = arith.subf %9, %10 : vector<16x128xf32>
    %cst_1 = arith.constant 0.0157480314 : f32
    %12 = vector.broadcast %cst_1 : f32 to vector<16x128xf32>
    %13 = arith.mulf %5, %12 : vector<16x128xf32>
    %cst_2 = arith.constant 1.000000e+00 : f32
    %14 = vector.broadcast %cst_2 : f32 to vector<16x128xf32>
    %15 = arith.subf %13, %14 : vector<16x128xf32>
    %16 = arith.mulf %15, %15 : vector<16x128xf32>
    %17 = arith.mulf %11, %11 : vector<16x128xf32>
    %18 = arith.addf %16, %17 : vector<16x128xf32>
    %19 = math.sqrt %18 : vector<16x128xf32>
    %cst_3 = arith.constant 0.699999988 : f32
    %20 = vector.broadcast %cst_3 : f32 to vector<16x128xf32>
    %21 = arith.subf %19, %20 : vector<16x128xf32>
    %cst_4 = arith.constant 2.000000e+00 : f32
    %22 = vector.broadcast %cst_4 : f32 to vector<16x128xf32>
    %23 = arith.mulf %22, %21 : vector<16x128xf32>
    %24 = math.exp %23 : vector<16x128xf32>
    %cst_5 = arith.constant 0.255492419 : f32
    %25 = vector.broadcast %cst_5 : f32 to vector<16x128xf32>
    %26 = arith.subf %24, %25 : vector<16x128xf32>
    %cst_6 = arith.constant 0.255320936 : f32
    %27 = vector.broadcast %cst_6 : f32 to vector<16x128xf32>
    %28 = arith.mulf %26, %27 : vector<16x128xf32>
    %c1 = arith.constant 1 : index
    %29 = memref.load %arg1[%c1] : memref<25xf32, #tpu.memory_space<smem>>
    %c2 = arith.constant 2 : index
    %30 = memref.load %arg1[%c2] : memref<25xf32, #tpu.memory_space<smem>>
    %c3 = arith.constant 3 : index
    %31 = memref.load %arg1[%c3] : memref<25xf32, #tpu.memory_space<smem>>
    %c4 = arith.constant 4 : index
    %32 = memref.load %arg1[%c4] : memref<25xf32, #tpu.memory_space<smem>>
    %33 = vector.broadcast %29 : f32 to vector<16x128xf32>
    %34 = arith.subf %15, %33 : vector<16x128xf32>
    %35 = vector.broadcast %30 : f32 to vector<16x128xf32>
    %36 = arith.subf %11, %35 : vector<16x128xf32>
    %37 = arith.mulf %34, %34 : vector<16x128xf32>
    %38 = arith.mulf %36, %36 : vector<16x128xf32>
    %39 = arith.addf %37, %38 : vector<16x128xf32>
    %40 = math.sqrt %39 : vector<16x128xf32>
    %41 = vector.broadcast %31 : f32 to vector<16x128xf32>
    %42 = arith.mulf %40, %41 : vector<16x128xf32>
    %43 = vector.broadcast %32 : f32 to vector<16x128xf32>
    %44 = arith.subf %43, %42 : vector<16x128xf32>
    %45 = math.exp %44 : vector<16x128xf32>
    %46 = arith.maximumf %28, %45 : vector<16x128xf32>
    %c5 = arith.constant 5 : index
    %47 = memref.load %arg1[%c5] : memref<25xf32, #tpu.memory_space<smem>>
    %c6 = arith.constant 6 : index
    %48 = memref.load %arg1[%c6] : memref<25xf32, #tpu.memory_space<smem>>
    %c7 = arith.constant 7 : index
    %49 = memref.load %arg1[%c7] : memref<25xf32, #tpu.memory_space<smem>>
    %c8 = arith.constant 8 : index
    %50 = memref.load %arg1[%c8] : memref<25xf32, #tpu.memory_space<smem>>
    %51 = vector.broadcast %47 : f32 to vector<16x128xf32>
    %52 = arith.subf %15, %51 : vector<16x128xf32>
    %53 = vector.broadcast %48 : f32 to vector<16x128xf32>
    %54 = arith.subf %11, %53 : vector<16x128xf32>
    %55 = arith.mulf %52, %52 : vector<16x128xf32>
    %56 = arith.mulf %54, %54 : vector<16x128xf32>
    %57 = arith.addf %55, %56 : vector<16x128xf32>
    %58 = math.sqrt %57 : vector<16x128xf32>
    %59 = vector.broadcast %49 : f32 to vector<16x128xf32>
    %60 = arith.mulf %58, %59 : vector<16x128xf32>
    %61 = vector.broadcast %50 : f32 to vector<16x128xf32>
    %62 = arith.subf %61, %60 : vector<16x128xf32>
    %63 = math.exp %62 : vector<16x128xf32>
    %64 = arith.maximumf %46, %63 : vector<16x128xf32>
    %c9 = arith.constant 9 : index
    %65 = memref.load %arg1[%c9] : memref<25xf32, #tpu.memory_space<smem>>
    %c10 = arith.constant 10 : index
    %66 = memref.load %arg1[%c10] : memref<25xf32, #tpu.memory_space<smem>>
    %c11 = arith.constant 11 : index
    %67 = memref.load %arg1[%c11] : memref<25xf32, #tpu.memory_space<smem>>
    %c12 = arith.constant 12 : index
    %68 = memref.load %arg1[%c12] : memref<25xf32, #tpu.memory_space<smem>>
    %69 = vector.broadcast %65 : f32 to vector<16x128xf32>
    %70 = arith.subf %15, %69 : vector<16x128xf32>
    %71 = vector.broadcast %66 : f32 to vector<16x128xf32>
    %72 = arith.subf %11, %71 : vector<16x128xf32>
    %73 = arith.mulf %70, %70 : vector<16x128xf32>
    %74 = arith.mulf %72, %72 : vector<16x128xf32>
    %75 = arith.addf %73, %74 : vector<16x128xf32>
    %76 = math.sqrt %75 : vector<16x128xf32>
    %77 = vector.broadcast %67 : f32 to vector<16x128xf32>
    %78 = arith.mulf %76, %77 : vector<16x128xf32>
    %79 = vector.broadcast %68 : f32 to vector<16x128xf32>
    %80 = arith.subf %79, %78 : vector<16x128xf32>
    %81 = math.exp %80 : vector<16x128xf32>
    %82 = arith.maximumf %64, %81 : vector<16x128xf32>
    %c13 = arith.constant 13 : index
    %83 = memref.load %arg1[%c13] : memref<25xf32, #tpu.memory_space<smem>>
    %c14 = arith.constant 14 : index
    %84 = memref.load %arg1[%c14] : memref<25xf32, #tpu.memory_space<smem>>
    %c15 = arith.constant 15 : index
    %85 = memref.load %arg1[%c15] : memref<25xf32, #tpu.memory_space<smem>>
    %c16 = arith.constant 16 : index
    %86 = memref.load %arg1[%c16] : memref<25xf32, #tpu.memory_space<smem>>
    %87 = vector.broadcast %83 : f32 to vector<16x128xf32>
    %88 = arith.subf %15, %87 : vector<16x128xf32>
    %89 = vector.broadcast %84 : f32 to vector<16x128xf32>
    %90 = arith.subf %11, %89 : vector<16x128xf32>
    %91 = arith.mulf %88, %88 : vector<16x128xf32>
    %92 = arith.mulf %90, %90 : vector<16x128xf32>
    %93 = arith.addf %91, %92 : vector<16x128xf32>
    %94 = math.sqrt %93 : vector<16x128xf32>
    %95 = vector.broadcast %85 : f32 to vector<16x128xf32>
    %96 = arith.mulf %94, %95 : vector<16x128xf32>
    %97 = vector.broadcast %86 : f32 to vector<16x128xf32>
    %98 = arith.subf %97, %96 : vector<16x128xf32>
    %99 = math.exp %98 : vector<16x128xf32>
    %100 = arith.maximumf %82, %99 : vector<16x128xf32>
    %c17 = arith.constant 17 : index
    %101 = memref.load %arg1[%c17] : memref<25xf32, #tpu.memory_space<smem>>
    %c18 = arith.constant 18 : index
    %102 = memref.load %arg1[%c18] : memref<25xf32, #tpu.memory_space<smem>>
    %c19 = arith.constant 19 : index
    %103 = memref.load %arg1[%c19] : memref<25xf32, #tpu.memory_space<smem>>
    %c20 = arith.constant 20 : index
    %104 = memref.load %arg1[%c20] : memref<25xf32, #tpu.memory_space<smem>>
    %105 = vector.broadcast %101 : f32 to vector<16x128xf32>
    %106 = arith.subf %15, %105 : vector<16x128xf32>
    %107 = vector.broadcast %102 : f32 to vector<16x128xf32>
    %108 = arith.subf %11, %107 : vector<16x128xf32>
    %109 = arith.mulf %106, %106 : vector<16x128xf32>
    %110 = arith.mulf %108, %108 : vector<16x128xf32>
    %111 = arith.addf %109, %110 : vector<16x128xf32>
    %112 = math.sqrt %111 : vector<16x128xf32>
    %113 = vector.broadcast %103 : f32 to vector<16x128xf32>
    %114 = arith.mulf %112, %113 : vector<16x128xf32>
    %115 = vector.broadcast %104 : f32 to vector<16x128xf32>
    %116 = arith.subf %115, %114 : vector<16x128xf32>
    %117 = math.exp %116 : vector<16x128xf32>
    %118 = arith.maximumf %100, %117 : vector<16x128xf32>
    %c21 = arith.constant 21 : index
    %119 = memref.load %arg1[%c21] : memref<25xf32, #tpu.memory_space<smem>>
    %c22 = arith.constant 22 : index
    %120 = memref.load %arg1[%c22] : memref<25xf32, #tpu.memory_space<smem>>
    %c23 = arith.constant 23 : index
    %121 = memref.load %arg1[%c23] : memref<25xf32, #tpu.memory_space<smem>>
    %c24 = arith.constant 24 : index
    %122 = memref.load %arg1[%c24] : memref<25xf32, #tpu.memory_space<smem>>
    %123 = vector.broadcast %119 : f32 to vector<16x128xf32>
    %124 = arith.subf %15, %123 : vector<16x128xf32>
    %125 = vector.broadcast %120 : f32 to vector<16x128xf32>
    %126 = arith.subf %11, %125 : vector<16x128xf32>
    %127 = arith.mulf %124, %124 : vector<16x128xf32>
    %128 = arith.mulf %126, %126 : vector<16x128xf32>
    %129 = arith.addf %127, %128 : vector<16x128xf32>
    %130 = math.sqrt %129 : vector<16x128xf32>
    %131 = vector.broadcast %121 : f32 to vector<16x128xf32>
    %132 = arith.mulf %130, %131 : vector<16x128xf32>
    %133 = vector.broadcast %122 : f32 to vector<16x128xf32>
    %134 = arith.subf %133, %132 : vector<16x128xf32>
    %135 = math.exp %134 : vector<16x128xf32>
    %136 = arith.maximumf %118, %135 : vector<16x128xf32>
    %c0 = arith.constant 0 : index
    %137 = memref.load %arg1[%c0] : memref<25xf32, #tpu.memory_space<smem>>
    %138 = vector.broadcast %137 : f32 to vector<16x128xf32>
    %139 = arith.mulf %136, %138 : vector<16x128xf32>
    %cst_7 = arith.constant 2.000000e-01 : f32
    %140 = vector.broadcast %cst_7 : f32 to vector<16x128xf32>
    %141 = arith.mulf %140, %139 : vector<16x128xf32>
    %cst_8 = arith.constant 1.000000e+00 : f32
    %142 = vector.broadcast %cst_8 : f32 to vector<16x128xf32>
    %143 = arith.subf %142, %141 : vector<16x128xf32>
    %cst_9 = arith.constant 5.000000e-01 : f32
    %144 = vector.broadcast %cst_9 : f32 to vector<16x128xf32>
    %145 = arith.mulf %144, %139 : vector<16x128xf32>
    %cst_10 = arith.constant 1.000000e+00 : f32
    %146 = vector.broadcast %cst_10 : f32 to vector<16x128xf32>
    %147 = arith.subf %146, %145 : vector<16x128xf32>
    %c0_11 = arith.constant 0 : index
    %c0_12 = arith.constant 0 : index
    %c0_13 = arith.constant 0 : index
    %148 = vector.load %arg2[%c0_11, %c0_12, %c0_13] : memref<3x16x128xf32, #tpu.memory_space<vmem>>, vector<1x16x128xf32>
    %149 = vector.shape_cast %148 : vector<1x16x128xf32> to vector<16x128xf32>
    %150 = arith.mulf %149, %143 : vector<16x128xf32>
    %c0_14 = arith.constant 0 : index
    %c0_15 = arith.constant 0 : index
    %c0_16 = arith.constant 0 : index
    %151 = vector.load %arg3[%c0_14, %c0_15, %c0_16] : memref<3x16x128xf32, #tpu.memory_space<vmem>>, vector<1x16x128xf32>
    %152 = vector.shape_cast %151 : vector<1x16x128xf32> to vector<16x128xf32>
    %153 = vector.shape_cast %150 : vector<16x128xf32> to vector<1x16x128xf32>
    tpu.vector_store %arg3[%c0_14, %c0_15, %c0_16], %153 {strides = array<i32>} : memref<3x16x128xf32, #tpu.memory_space<vmem>>, vector<1x16x128xf32>,
    %c1_17 = arith.constant 1 : index
    %c0_18 = arith.constant 0 : index
    %c0_19 = arith.constant 0 : index
    %154 = vector.load %arg2[%c1_17, %c0_18, %c0_19] : memref<3x16x128xf32, #tpu.memory_space<vmem>>, vector<1x16x128xf32>
    %155 = vector.shape_cast %154 : vector<1x16x128xf32> to vector<16x128xf32>
    %156 = arith.mulf %155, %147 : vector<16x128xf32>
    %c1_20 = arith.constant 1 : index
    %c0_21 = arith.constant 0 : index
    %c0_22 = arith.constant 0 : index
    %157 = vector.load %arg3[%c1_20, %c0_21, %c0_22] : memref<3x16x128xf32, #tpu.memory_space<vmem>>, vector<1x16x128xf32>
    %158 = vector.shape_cast %157 : vector<1x16x128xf32> to vector<16x128xf32>
    %159 = vector.shape_cast %156 : vector<16x128xf32> to vector<1x16x128xf32>
    tpu.vector_store %arg3[%c1_20, %c0_21, %c0_22], %159 {strides = array<i32>} : memref<3x16x128xf32, #tpu.memory_space<vmem>>, vector<1x16x128xf32>,
    %c2_23 = arith.constant 2 : index
    %c0_24 = arith.constant 0 : index
    %c0_25 = arith.constant 0 : index
    %160 = vector.load %arg2[%c2_23, %c0_24, %c0_25] : memref<3x16x128xf32, #tpu.memory_space<vmem>>, vector<1x16x128xf32>
    %161 = vector.shape_cast %160 : vector<1x16x128xf32> to vector<16x128xf32>
    %162 = arith.mulf %161, %147 : vector<16x128xf32>
    %c2_26 = arith.constant 2 : index
    %c0_27 = arith.constant 0 : index
    %c0_28 = arith.constant 0 : index
    %163 = vector.load %arg3[%c2_26, %c0_27, %c0_28] : memref<3x16x128xf32, #tpu.memory_space<vmem>>, vector<1x16x128xf32>
    %164 = vector.shape_cast %163 : vector<1x16x128xf32> to vector<16x128xf32>
    %165 = vector.shape_cast %162 : vector<16x128xf32> to vector<1x16x128xf32>
    tpu.vector_store %arg3[%c2_26, %c0_27, %c0_28], %165 {strides = array<i32>} : memref<3x16x128xf32, #tpu.memory_space<vmem>>, vector<1x16x128xf32>,
    return
  }
  func.func @transform_0(%arg0: i32) -> i32 {
    %c0_i32 = arith.constant 0 : i32
    %c0_i32_0 = arith.constant 0 : i32
    return %c0_i32 : i32
  }
  func.func @transform_1(%arg0: i32) -> (i32, i32, i32) {
    %c0_i32 = arith.constant 0 : i32
    %c0_i32_0 = arith.constant 0 : i32
    %c0_i32_1 = arith.constant 0 : i32
    return %c0_i32, %arg0, %c0_i32_0 : i32, i32, i32
  }
  func.func @transform_2(%arg0: i32) -> (i32, i32, i32) {
    %c0_i32 = arith.constant 0 : i32
    %c0_i32_0 = arith.constant 0 : i32
    %c0_i32_1 = arith.constant 0 : i32
    return %c0_i32, %arg0, %c0_i32_0 : i32, i32, i32
  }
}

</mosaic_0001>

<bundles_post_ra>
// kernel: tpu_custom_call.1
= control target key start
LH: loop header
LB: loop body
LE: loop exit
PB: predicated region body
PF: predicated region fallthrough
CT: control target
= control target key end

     0   :  { %7 = vsyncpa [#allocation5], 0  ;;  %s1438_s0 = inlined_call_operand.hbm [shape: f32[25], index: 0, kind: input, shape index: {}]   ;;  %s1439_s1 = inlined_call_operand.hbm [shape: f32[3,64,128], index: 1, kind: input, shape index: {}]   ;;  %s1440_s2 = inlined_call_operand.hbm [shape: f32[3,64,128], index: 2, kind: output, shape index: {}]  }
   0x1   :  { %8 = vsyncpa [#allocation3], 0 }
   0x2   :  { %10 = vsyncpa [#allocation3 + $0x1], 0 }
   0x3   :  { %11 = vsyncpa [#allocation4], 0 }
   0x4   :  { %13 = vsyncpa [#allocation4 + $0x1], 0  ;;  %s1003_s9 = smov 0   ;;  %s1005_s10 = smov 0  }
   0x5   :  { %s1007_s11 = smov 0   ;;  %s1009_s12 = smov 0  }
   0x6 LB: > { %s1024_s13 = sadd.s32 4294967295, %s972_s12   ;;  %s723_s14 = sadd.s32 4294967294, %s972_s12   ;;  %s972_s12 = sphi %s1009_s12, %s1449_s12   ;;  %s968_s11 = sphi %s1007_s11, %s1448_s11   ;;  %s964_s10 = sphi %s1005_s10, %s1447_s10   ;;  %s960_s9 = sphi %s1003_s9, %s1446_s9  }
   0x7   : > { %s1028_s15 = sadd.s32 1, %s972_s12   ;;  %s47_s16 = sadd.s32 1, %s968_s11 }
   0x8   : > { %s44_s17 = ssub.s32 %s972_s12, %s1028_s15  ;;  %p54_p0 = scmp.ne.s32.totalorder %s968_s11, %s964_s10 }
   0x9   : > { %p45_p1 = scmp.eq.s32.totalorder %s44_s17, 0  ;;  %p55_p2 = scmp.eq.s32.totalorder %s972_s12, 0 }
   0xa   : > { %p60_p3 = scmp.ne.s32.totalorder %s964_s10, %s960_s9  ;;  %p61_p4 = scmp.eq.s32.totalorder %s1024_s13, 0 }
   0xb   : > { %s1040_s18 = scalar_select %p45_p1, %s968_s11, %s47_s16  }
   0xc   : > { %p1042_p5 = por %p55_p2, %p54_p0  ;;  %p1048_p6 = por %p61_p4, %p60_p3 }
   0xd   : > { %p84_p7 = scmp.eq.s32.totalorder %s1024_s13, 3  ;;  %p90_p8 = scmp.eq.s32.totalorder %s723_s14, 3 }
   0xe   : > { %p724_p9 = scmp.ge.s32.totalorder %s972_s12, 1  ;;  %p97_p10 = scmp.lt.s32.totalorder %s972_s12, 5 }
   0xf   : > { %p1055_p11 = por %p84_p7, %p54_p0  ;;  %p1059_p12 = por %p90_p8, %p60_p3 }
  0x10   : > { %p1063_p13 = pnand %p724_p9, %p97_p10  ;;  %s109_s26 = sshll.u32 %s1438_s0, 4  ;;  %s110_s26 = int_to_ptr.hbm [resolvable:$true] %s109_s26 }
  0x11   : > { %s974_s27 = smov [#allocation2]   ;;  %p726_p2 = scmp.ge.s32.totalorder %s972_s12, 4 }
  0x12   : > { %p802_p1 = pneg %p1063_p13 }
  0x13   : > { %116 = sbr.rel (%p726_p2) target bundleno = 38 (0x26), region = 20 }
  0x14   : > { %p803_p0 = pnand %p802_p1, %p61_p4 }
  0x16   : > { %805 = dma.hbm_to_smem (!%p803_p0), %s110_s26, 16, %s974_s27, [#allocation5]  }
  0x18   : > { %s120_s28 = sand.u32 1, %s968_s11   ;;  %s777_s29 = sshll.u32 %s972_s12, 4 }
  0x19   : > { %s779_s30 = smul.u32 48, %s120_s28  ;;  %s129_s5 = scalar_lea.hbm %s1439_s1, %s777_s29 }
  0x1a   : > { %s142_s6 = sshll.u32 %s129_s5, 4  ;;  %s975_s17 = smov 1024   ;;  %s143_s6 = int_to_ptr.hbm [resolvable:$true] %s142_s6 }
  0x1b   : > { %s783_s7 = scalar_select %p1042_p5, [#allocation0], [#allocation12] }
  0x1c   : > { %s124_s8 = scalar_lea.vmem [#allocation6], %s779_s30  ;;  %784 = sst [smem:[#allocation9]] (%p1042_p5), %s975_s17 }
  0x1d   : > { %s144_s14 = sshll.u32 %s124_s8, 4  ;;  %s134_s16 = sld [smem:[%s783_s7]]   ;;  %s145_s14 = int_to_ptr.vmem [resolvable:$true] %s144_s14 }
  0x1e   : > { %s976_s24 = smov 256   ;;  %s977_s25 = smov 2  }
  0x1f   : > { %785 = sst [smem:[#allocation9 + $0x1]] (%p1042_p5), %s976_s24  ;;  %s978_s26 = smov 128  }
  0x20   : > { %786 = sst [smem:[#allocation9 + $0x2]] (%p1042_p5), %s977_s25  ;;  %s979_s29 = smov 8  }
  0x21   : > { %787 = sst [smem:[#allocation9 + $0x3]] (%p1042_p5), %s978_s26  ;;  %s121_s3 = scalar_lea.sflag [#allocation3], %s120_s28 }
  0x22   : > { %788 = sst [smem:[#allocation9 + $0x4]] (%p1042_p5), %s978_s26  ;;  %s980_s4 = smov [#allocation8]  }
  0x23   : > { %s729_s27 = sshll.u32 %s134_s16, 26  ;;  %789 = sst [smem:[#allocation9 + $0x5]] (%p1042_p5), %s979_s29 }
  0x24   : > { %s730_s30 = sadd.s32 134217728, %s729_s27 }
  0x25   : > { %790 = dma.general (%p1042_p5), %s143_s6, 768, %s145_s14, %s121_s3, %s980_s4, [#allocation9], %s730_s30, 0  }
  0x26 PF: > { %169 = sbr.rel (%p1063_p13) target bundleno = 174 (0xae), region = 28 }
  0x2b   : > { %947 = dma.done.wait (%p61_p4), [#allocation5], 16  }
  0x2c   : > { %949 = vsyncadd (%p61_p4), [#allocation5], 4294967280  ;;  %s1103_s5 = sand.u32 1, %s964_s10  }
  0x2d   : > { %s780_s28 = smul.u32 48, %s1103_s5  ;;  %s177_s19 = scalar_lea.sflag [#allocation3], %s1103_s5 }
  0x2f   : > { %s1109_s6 = scalar_lea.vmem [#allocation6], %s780_s28 }
  0x30   : > { %951 = dma.done.wait (%p1048_p6), %s177_s19, 768  }
  0x31   : > { %953 = vsyncadd (%p1048_p6), %s177_s19, 4294966528 }
  0x32   : > { %186 = sfence }
  0x33   : > { %s733_s23 = sshll.u32 %s1024_s13, 4  ;;  %v207_v0 = vlaneseq  ;;  %s741_s8 = sld [smem:[#allocation2 + $0x1]] }
  0x34   : > { %s206_s7 = scvt.s32.f32 %s733_s23  ;;  %s742_s14 = sld [smem:[#allocation2 + $0x2]] }
  0x35   : > { %v208_v1 = vshrl.u32 %v207_v0, 7  ;;  %v213_v2 = vand.u32 127, %v207_v0  ;;  %s745_s16 = sld [smem:[#allocation2 + $0x5]] }
  0x36   : > { %v215_v3 = vstv %s206_s7  ;;  %s746_s20 = sld [smem:[#allocation2 + $0x6]] }
  0x37   : > { %v209_v4 = vadd.s32 8, %v208_v1  ;;  %v210_v5 = vcvt.s32.f32 %v208_v1  ;;  %v214_v6 = vcvt.s32.f32 %v213_v2  ;;  %s749_s17 = sld [smem:[#allocation2 + $0x9]] }
  0x38   : > { %s1137_s24 = sld [smem:[#allocation2 + $0xa]] }
  0x39   : > { %v211_v7 = vcvt.s32.f32 %v209_v4  ;;  %v216_v8 = vadd.f32 %v215_v3, %v210_v5  ;;  %v222_v9 = vmul.f32 0.015748031, %v214_v6  ;;  %v269_v10 = vstv %s741_s8  ;;  %s1142_s25 = sld [smem:[#allocation2 + $0x3]] }
  0x3a   : > { %v271_v14 = vstv %s742_s14  ;;  %s1179_s26 = sld [smem:[#allocation2 + $0x4]] }
  0x3b   : > { %v217_v11 = vadd.f32 %v215_v3, %v211_v7  ;;  %v218_v12 = vmul.f32 0.031746034, %v216_v8  ;;  %v1118_v13 = vadd.f32 -1.0, %v222_v9  ;;  %v319_v19 = vstv %s745_s16  ;;  %s1185_s27 = sld [smem:[#allocation2 + $0x7]] }
  0x3c   : > { %v321_v25 = vstv %s746_s20  ;;  %s1189_s29 = sld [smem:[#allocation2 + $0xd]] }
  0x3d   : > { %v219_v15 = vmul.f32 0.031746034, %v217_v11  ;;  %v1120_v16 = vadd.f32 -1.0, %v218_v12  ;;  %v224_v17 = vmul.f32 %v1118_v13, %v1118_v13  ;;  %v270_v18 = vsub.f32 %v1118_v13, %v269_v10  ;;  %s1203_s30 = sld [smem:[#allocation2 + $0xe]] }
  0x3e   : > { %v320_v24 = vsub.f32 %v1118_v13, %v319_v19  ;;  %v369_v40 = vstv %s749_s17  ;;  %v371_v45 = vstv %s1137_s24  ;;  %s1213_s3 = sld [smem:[#allocation2 + $0x8]] }
  0x3f   : > { %v1125_v20 = vadd.f32 -1.0, %v219_v15  ;;  %v225_v21 = vmul.f32 %v1120_v16, %v1120_v16  ;;  %v272_v22 = vsub.f32 %v1120_v16, %v271_v14  ;;  %v274_v23 = vmul.f32 %v270_v18, %v270_v18  ;;  %s1244_s4 = sld [smem:[#allocation2 + $0xb]] }
  0x40   : > { %v322_v30 = vsub.f32 %v1120_v16, %v321_v25  ;;  %v324_v33 = vmul.f32 %v320_v24, %v320_v24  ;;  %v370_v44 = vsub.f32 %v1118_v13, %v369_v40  ;;  %v303_v47 = vstv %s1142_s25  ;;  %s1247_s19 = sld [smem:[#allocation2 + $0x11]] }
  0x41   : > { %v226_v26 = vmul.f32 %v1125_v20, %v1125_v20  ;;  %v1133_v27 = vadd.f32 %v225_v21, %v224_v17  ;;  %v273_v28 = vsub.f32 %v1125_v20, %v271_v14  ;;  %v275_v29 = vmul.f32 %v272_v22, %v272_v22  ;;  %s1249_s7 = sld [smem:[#allocation2 + $0xc]] }
  0x42   : > { %v323_v32 = vsub.f32 %v1125_v20, %v321_v25  ;;  %v325_v36 = vmul.f32 %v322_v30, %v322_v30  ;;  %v372_v51 = vsub.f32 %v1120_v16, %v371_v45  ;;  %v373_v52 = vsub.f32 %v1125_v20, %v371_v45  ;;  %s1255_s8 = sld [smem:[#allocation2 + $0x12]] }
  0x43   : > { %v1139_v31 = vadd.f32 %v226_v26, %v224_v17  ;;  %859 = vrsqrt.f32 %v1133_v27  ;;  %v276_v34 = vmul.f32 %v273_v28, %v273_v28  ;;  %v1145_v35 = vadd.f32 %v275_v29, %v274_v23  ;;  %s1257_s14 = sld [smem:[#allocation2 + $0x15]] }
  0x44   : > { %v326_v38 = vmul.f32 %v323_v32, %v323_v32  ;;  %v1151_v39 = vadd.f32 %v325_v36, %v324_v33  ;;  %vm236_vm0 = vcmp.eq.f32.partialorder %v1133_v27, inf  ;;  %vm238_vm1 = vcmp.eq.f32.partialorder %v1133_v27, 0.0  ;;  %s1264_s16 = sld [smem:[#allocation2 + $0x16]] }
  0x45   : > { %861 = vrsqrt.f32 %v1139_v31  ;;  %v1148_v37 = vadd.f32 %v276_v34, %v274_v23  ;;  %v239_v53 = vand.u32 2147483648, %v1133_v27  ;;  %vm248_vm2 = vcmp.eq.f32.partialorder %v1139_v31, inf  ;;  %s1280_s20 = sld [smem:[#allocation2 + $0xf]] }
  0x46   : > { %863 = vrsqrt.f32 %v1145_v35  ;;  %v1154_v42 = vadd.f32 %v326_v38, %v324_v33  ;;  %v374_v55 = vmul.f32 %v370_v44, %v370_v44  ;;  %vm250_vm3 = vcmp.eq.f32.partialorder %v1139_v31, 0.0  ;;  %s1285_s17 = sld [smem:[#allocation2 + $0x10]] }
  0x47   : > { %865 = vrsqrt.f32 %v1148_v37  ;;  %v375_v59 = vmul.f32 %v372_v51, %v372_v51  ;;  %v251_v61 = vand.u32 2147483648, %v1139_v31  ;;  %v376_v0 = vmul.f32 %v373_v52, %v373_v52  ;;  %s1313_s24 = sld [smem:[#allocation2 + $0x13]] }
  0x48   : > { %867 = vrsqrt.f32 %v1151_v39  ;;  %vm286_vm4 = vcmp.eq.f32.partialorder %v1145_v35, inf  ;;  %vm288_vm5 = vcmp.eq.f32.partialorder %v1145_v35, 0.0  ;;  %v289_v23 = vand.u32 2147483648, %v1145_v35  ;;  %s1322_s25 = sld [smem:[#allocation2 + $0x14]] }
  0x49   : > { %v860_v41 = vpop.eup %859  ;;  %869 = vrsqrt.f32 %v1154_v42  ;;  %v1174_v4 = vadd.f32 %v375_v59, %v374_v55  ;;  %v1181_v15 = vadd.f32 %v376_v0, %v374_v55  ;;  %vm298_vm6 = vcmp.eq.f32.partialorder %v1148_v37, inf }
  0x4a   : > { %v230_v43 = vmul.f32 %v860_v41, %v1133_v27  ;;  %vm336_vm7 = vcmp.eq.f32.partialorder %v1151_v39, inf  ;;  %vm300_vm8 = vcmp.eq.f32.partialorder %v1148_v37, 0.0  ;;  %v301_v45 = vand.u32 2147483648, %v1148_v37 }
  0x4b   : > { %v862_v46 = vpop.eup %861  ;;  %871 = vrsqrt.f32 %v1174_v4  ;;  %vm338_vm9 = vcmp.eq.f32.partialorder %v1151_v39, 0.0  ;;  %v419_v59 = vstv %s1189_s29  ;;  %vm348_vm10 = vcmp.eq.f32.partialorder %v1154_v42, inf  ;;  %s565_s29 = sld [smem:[#allocation2]] }
  0x4c   : > { %v864_v48 = vpop.eup %863  ;;  %v231_v49 = vmul.f32 %v860_v41, %v230_v43  ;;  %v242_v50 = vmul.f32 %v862_v46, %v1139_v31  ;;  %873 = vrsqrt.f32 %v1181_v15  ;;  %vm350_vm11 = vcmp.eq.f32.partialorder %v1154_v42, 0.0 }
  0x4d   : > { %v280_v54 = vmul.f32 %v864_v48, %v1145_v35  ;;  %v866_v56 = vpop.eup %865  ;;  %v351_v0 = vand.u32 2147483648, %v1154_v42  ;;  %vm386_vm12 = vcmp.eq.f32.partialorder %v1174_v4, inf  ;;  %vm388_vm13 = vcmp.eq.f32.partialorder %v1174_v4, 0.0 }
  0x4e   : > { %v232_v57 = vmul.f32 0.5, %v231_v49  ;;  %v243_v58 = vmul.f32 %v862_v46, %v242_v50  ;;  %v868_v60 = vpop.eup %867  ;;  %v292_v63 = vmul.f32 %v866_v56, %v1148_v37  ;;  %vm398_vm14 = vcmp.eq.f32.partialorder %v1181_v15, inf }
  0x4f   : > { %v281_v62 = vmul.f32 %v864_v48, %v280_v54  ;;  %v330_v3 = vmul.f32 %v868_v60, %v1151_v39  ;;  %v870_v5 = vpop.eup %869  ;;  %vm400_vm15 = vcmp.eq.f32.partialorder %v1181_v15, 0.0 }
  0x50   : > { %v233_v1 = vsub.f32 1.5, %v232_v57  ;;  %v244_v2 = vmul.f32 0.5, %v243_v58  ;;  %v293_v7 = vmul.f32 %v866_v56, %v292_v63  ;;  %v342_v11 = vmul.f32 %v870_v5, %v1154_v42 }
  0x51   : > { %v282_v6 = vmul.f32 0.5, %v281_v62  ;;  %v331_v10 = vmul.f32 %v868_v60, %v330_v3  ;;  %v872_v40 = vpop.eup %871  ;;  %v353_v58 = vstv %s1185_s27  ;;  %v421_v3 = vstv %s1203_s30  ;;  %s1360_s27 = sld [smem:[#allocation2 + $0x18]]  ;;  %s202_s30 = scalar_lea.vmem [#allocation7], %s780_s28 }
  0x52   : > { %v234_v8 = vmul.f32 %v860_v41, %v233_v1  ;;  %v245_v9 = vsub.f32 1.5, %v244_v2  ;;  %v294_v14 = vmul.f32 0.5, %v293_v7  ;;  %v343_v21 = vmul.f32 %v870_v5, %v342_v11  ;;  %v874_v55 = vpop.eup %873 }
  0x53   : > { %v283_v12 = vsub.f32 1.5, %v282_v6  ;;  %v332_v19 = vmul.f32 0.5, %v331_v10  ;;  %v380_v51 = vmul.f32 %v872_v40, %v1174_v4  ;;  %v392_v63 = vmul.f32 %v874_v55, %v1181_v15 }
  0x54   : > { %v235_v17 = vmul.f32 %v234_v8, %v1133_v27  ;;  %v246_v18 = vmul.f32 %v862_v46, %v245_v9  ;;  %v295_v24 = vsub.f32 1.5, %v294_v14  ;;  %v344_v29 = vmul.f32 0.5, %v343_v21 }
  0x55   : > { %v284_v22 = vmul.f32 %v864_v48, %v283_v12  ;;  %v333_v28 = vsub.f32 1.5, %v332_v19  ;;  %v420_v2 = vsub.f32 %v1118_v13, %v419_v59  ;;  %v393_v7 = vmul.f32 %v874_v55, %v392_v63 }
  0x56   : > { %v237_v25 = vsel %vm236_vm0, %v1133_v27, %v235_v17  ;;  %v247_v26 = vmul.f32 %v246_v18, %v1139_v31  ;;  %v296_v33 = vmul.f32 %v866_v56, %v295_v24  ;;  %v345_v38 = vsub.f32 1.5, %v344_v29 }
  0x57   : > { %v240_v30 = vsel %vm238_vm1, %v239_v53, %v237_v25  ;;  %v285_v32 = vmul.f32 %v284_v22, %v1145_v35  ;;  %v334_v36 = vmul.f32 %v868_v60, %v333_v28  ;;  %v306_v53 = vstv %s1179_s26  ;;  %s1328_s26 = sld [smem:[#allocation2 + $0x17]] }
  0x58   : > { %v249_v34 = vsel %vm248_vm2, %v1139_v31, %v247_v26  ;;  %v737_v41 = vadd.f32 -0.7, %v240_v30  ;;  %v297_v44 = vmul.f32 %v296_v33, %v1148_v37  ;;  %v339_v31 = vand.u32 2147483648, %v1151_v39 }
  0x59   : > { %v252_v27 = vsel %vm250_vm3, %v251_v61, %v249_v34  ;;  %v287_v43 = vsel %vm286_vm4, %v1145_v35, %v285_v32  ;;  %v335_v46 = vmul.f32 %v334_v36, %v1151_v39  ;;  %v346_v50 = vmul.f32 %v870_v5, %v345_v38 }
  0x5a   : > { %v738_v48 = vadd.f32 -0.7, %v252_v27  ;;  %v299_v49 = vsel %vm298_vm6, %v1148_v37, %v297_v44  ;;  %v290_v52 = vsel %vm288_vm5, %v289_v23, %v287_v43  ;;  %v255_v56 = vmul.f32 2.0, %v737_v41 }
  0x5b   : > { %v337_v54 = vsel %vm336_vm7, %v1151_v39, %v335_v46  ;;  %v347_v57 = vmul.f32 %v346_v50, %v1154_v42  ;;  %v302_v60 = vsel %vm300_vm8, %v301_v45, %v299_v49  ;;  %v381_v35 = vmul.f32 %v872_v40, %v380_v51 }
  0x5c   : > { %v256_v61 = vmul.f32 2.0, %v738_v48  ;;  %v304_v39 = vmul.f32 %v303_v47, %v290_v52  ;;  %v340_v62 = vsel %vm338_vm9, %v339_v31, %v337_v54  ;;  %v257_v37 = vmul.f32 1.442695, %v255_v56 }
  0x5d   : > { %v382_v1 = vmul.f32 0.5, %v381_v35  ;;  %v305_v5 = vmul.f32 %v303_v47, %v302_v60  ;;  %v349_v6 = vsel %vm348_vm10, %v1154_v42, %v347_v57  ;;  %v354_v8 = vmul.f32 %v353_v58, %v340_v62 }
  0x5e   : > { %v356_v9 = vstv %s1213_s3  ;;  %v259_v11 = vmul.f32 1.442695, %v256_v61  ;;  %v307_v12 = vsub.f32 %v306_v53, %v304_v39  ;;  %v394_v14 = vmul.f32 0.5, %v393_v7  ;;  %s600_s3 = scalar_lea.sflag [#allocation4], %s1103_s5 }
  0x5f   : > { %v383_v10 = vsub.f32 1.5, %v382_v1  ;;  %v422_v17 = vsub.f32 %v1120_v16, %v421_v3  ;;  %v352_v47 = vsel %vm350_vm11, %v351_v0, %v349_v6  ;;  %v423_v19 = vsub.f32 %v1125_v20, %v421_v3 }
  0x60   : > { %v424_v21 = vmul.f32 %v420_v2, %v420_v2  ;;  %875 = vpow2.f32 %v257_v37  ;;  %v308_v22 = vsub.f32 %v306_v53, %v305_v5  ;;  %v395_v23 = vsub.f32 1.5, %v394_v14 }
  0x61   : > { %v384_v18 = vmul.f32 %v872_v40, %v383_v10  ;;  %v425_v24 = vmul.f32 %v422_v17, %v422_v17  ;;  %v357_v25 = vsub.f32 %v356_v9, %v354_v8  ;;  %v426_v26 = vmul.f32 %v423_v19, %v423_v19 }
  0x62   : > { %877 = vpow2.f32 %v259_v11  ;;  %v309_v28 = vmul.f32 1.442695, %v307_v12  ;;  %v355_v29 = vmul.f32 %v353_v58, %v352_v47  ;;  %v396_v30 = vmul.f32 %v874_v55, %v395_v23 }
  0x63   : > { %v385_v42 = vmul.f32 %v384_v18, %v1174_v4  ;;  %v1260_v32 = vadd.f32 %v425_v24, %v424_v21  ;;  %v1262_v33 = vadd.f32 %v426_v26, %v424_v21  ;;  %v311_v34 = vmul.f32 1.442695, %v308_v22 }
  0x64   : > { %v359_v36 = vmul.f32 1.442695, %v357_v25  ;;  %v403_v38 = vstv %s1244_s4  ;;  %v469_v40 = vstv %s1247_s19  ;;  %v389_v41 = vand.u32 2147483648, %v1174_v4 }
  0x65   : > { %879 = vrsqrt.f32 %v1260_v32  ;;  %v406_v43 = vstv %s1249_s7  ;;  %v358_v44 = vsub.f32 %v356_v9, %v355_v29  ;;  %v387_v45 = vsel %vm386_vm12, %v1174_v4, %v385_v42 }
  0x66   : > { %v876_v27 = vpop.eup %875  ;;  %881 = vpow2.f32 %v309_v28  ;;  %v397_v46 = vmul.f32 %v396_v30, %v1181_v15  ;;  %v470_v48 = vsub.f32 %v1118_v13, %v469_v40  ;;  %v401_v50 = vand.u32 2147483648, %v1181_v15 }
  0x67   : > { %883 = vrsqrt.f32 %v1262_v33  ;;  %v739_v49 = vadd.f32 -0.25549242, %v876_v27  ;;  %v471_v51 = vstv %s1255_s8  ;;  %v390_v52 = vsel %vm388_vm13, %v389_v41, %v387_v45 }
  0x68   : > { %v878_v31 = vpop.eup %877  ;;  %885 = vpow2.f32 %v311_v34  ;;  %v472_v53 = vsub.f32 %v1120_v16, %v471_v51  ;;  %v473_v54 = vsub.f32 %v1125_v20, %v471_v51  ;;  %v474_v55 = vmul.f32 %v470_v48, %v470_v48 }
  0x69   : > { %887 = vpow2.f32 %v359_v36  ;;  %v361_v57 = vmul.f32 1.442695, %v358_v44  ;;  %v399_v58 = vsel %vm398_vm14, %v1181_v15, %v397_v46  ;;  %v519_v59 = vstv %s1257_s14 }
  0x6a   : > { %v521_v60 = vstv %s1264_s16  ;;  %v740_v61 = vadd.f32 -0.25549242, %v878_v31  ;;  %v475_v4 = vmul.f32 %v472_v53, %v472_v53  ;;  %v476_v62 = vmul.f32 %v473_v54, %v473_v54 }
  0x6b   : > { %v880_v56 = vpop.eup %879  ;;  %v404_v0 = vmul.f32 %v403_v38, %v390_v52  ;;  %v520_v1 = vsub.f32 %v1118_v13, %v519_v59  ;;  %v522_v2 = vsub.f32 %v1120_v16, %v521_v60  ;;  %v523_v3 = vsub.f32 %v1125_v20, %v521_v60 }
  0x6c   : > { %v1292_v35 = vpop.eup %881  ;;  %v430_v39 = vmul.f32 %v880_v56, %v1260_v32  ;;  %v402_v5 = vsel %vm400_vm15, %v401_v50, %v399_v58  ;;  %v1303_v8 = vadd.f32 %v475_v4, %v474_v55  ;;  %v1305_v10 = vadd.f32 %v476_v62, %v474_v55 }
  0x6d   : > { %v884_v63 = vpop.eup %883  ;;  %v524_v13 = vmul.f32 %v520_v1, %v520_v1  ;;  %v525_v16 = vmul.f32 %v522_v2, %v522_v2  ;;  %v526_v11 = vmul.f32 %v523_v3, %v523_v3  ;;  %v263_v20 = vmul.f32 0.25532094, %v739_v49 }
  0x6e   : > { %v1298_v37 = vpop.eup %885  ;;  %v431_v6 = vmul.f32 %v880_v56, %v430_v39  ;;  %v442_v7 = vmul.f32 %v884_v63, %v1262_v33  ;;  %889 = vrsqrt.f32 %v1303_v8  ;;  %v405_v15 = vmul.f32 %v403_v38, %v402_v5 }
  0x6f   : > { %v888_v9 = vpop.eup %887  ;;  %891 = vrsqrt.f32 %v1305_v10  ;;  %v453_v18 = vstv %s1280_s20  ;;  %v456_v19 = vstv %s1285_s17  ;;  %v407_v21 = vsub.f32 %v406_v43, %v404_v0 }
  0x70   : > { %v432_v12 = vmul.f32 0.5, %v431_v6  ;;  %v443_v14 = vmul.f32 %v884_v63, %v442_v7  ;;  %893 = vpow2.f32 %v361_v57  ;;  %v1315_v22 = vadd.f32 %v525_v16, %v524_v13 }
  0x71   : > { %v1317_v23 = vadd.f32 %v526_v11, %v524_v13  ;;  %v1319_v24 = vmul.f32 0.25532094, %v740_v61  ;;  %v313_v25 = vmax.f32 %v263_v20, %v1292_v35  ;;  %v408_v29 = vsub.f32 %v406_v43, %v405_v15 }
  0x72   : > { %v433_v17 = vsub.f32 1.5, %v432_v12  ;;  %v444_v47 = vmul.f32 0.5, %v443_v14  ;;  %vm436_vm0 = vcmp.eq.f32.partialorder %v1260_v32, inf  ;;  %v439_v42 = vand.u32 2147483648, %v1260_v32 }
  0x73   : > { %895 = vrsqrt.f32 %v1315_v22  ;;  %vm438_vm1 = vcmp.eq.f32.partialorder %v1260_v32, 0.0  ;;  %v409_v40 = vmul.f32 1.442695, %v407_v21  ;;  %vm448_vm2 = vcmp.eq.f32.partialorder %v1262_v33, inf }
  0x74   : > { %v434_v26 = vmul.f32 %v880_v56, %v433_v17  ;;  %v445_v28 = vsub.f32 1.5, %v444_v47  ;;  %v890_v30 = vpop.eup %889  ;;  %897 = vrsqrt.f32 %v1317_v23  ;;  %v451_v27 = vand.u32 2147483648, %v1262_v33 }
  0x75   : > { %v892_v38 = vpop.eup %891  ;;  %v480_v41 = vmul.f32 %v890_v30, %v1303_v8  ;;  %vm450_vm3 = vcmp.eq.f32.partialorder %v1262_v33, 0.0  ;;  %v314_v31 = vmax.f32 %v1319_v24, %v1298_v37  ;;  %v411_v48 = vmul.f32 1.442695, %v408_v29 }
  0x76   : > { %v435_v34 = vmul.f32 %v434_v26, %v1260_v32  ;;  %v446_v36 = vmul.f32 %v884_v63, %v445_v28  ;;  %v492_v45 = vmul.f32 %v892_v38, %v1305_v10  ;;  %v1341_v46 = vpop.eup %893  ;;  %v1345_v51 = vmax.f32 %v313_v25, %v888_v9 }
  0x77   : > { %v481_v50 = vmul.f32 %v890_v30, %v480_v41  ;;  %899 = vpow2.f32 %v409_v40  ;;  %v503_v57 = vstv %s1313_s24  ;;  %v506_v35 = vstv %s1322_s25 }
  0x78   : > { %v437_v43 = vsel %vm436_vm0, %v1260_v32, %v435_v34  ;;  %v447_v44 = vmul.f32 %v446_v36, %v1262_v33  ;;  %v493_v53 = vmul.f32 %v892_v38, %v492_v45  ;;  %901 = vpow2.f32 %v411_v48 }
  0x79   : > { %v440_v49 = vsel %vm438_vm1, %v439_v42, %v437_v43  ;;  %v896_v54 = vpop.eup %895  ;;  %v482_v56 = vmul.f32 0.5, %v481_v50  ;;  %v553_v62 = vstv %s1328_s26  ;;  %vm486_vm4 = vcmp.eq.f32.partialorder %v1303_v8, inf }
  0x7a   : > { %v449_v32 = vsel %vm448_vm2, %v1262_v33, %v447_v44  ;;  %v454_v52 = vmul.f32 %v453_v18, %v440_v49  ;;  %v898_v58 = vpop.eup %897  ;;  %v494_v60 = vmul.f32 0.5, %v493_v53  ;;  %v530_v61 = vmul.f32 %v896_v54, %v1315_v22 }
  0x7b   : > { %v452_v55 = vsel %vm450_vm3, %v451_v27, %v449_v32  ;;  %v483_v39 = vsub.f32 1.5, %v482_v56  ;;  %v542_v4 = vmul.f32 %v898_v58, %v1317_v23  ;;  %vm488_vm5 = vcmp.eq.f32.partialorder %v1303_v8, 0.0 }
  0x7c   : > { %v455_v59 = vmul.f32 %v453_v18, %v452_v55  ;;  %v457_v33 = vsub.f32 %v456_v19, %v454_v52  ;;  %v495_v63 = vsub.f32 1.5, %v494_v60  ;;  %v531_v0 = vmul.f32 %v896_v54, %v530_v61 }
  0x7d   : > { %v484_v2 = vmul.f32 %v890_v30, %v483_v39  ;;  %v543_v3 = vmul.f32 %v898_v58, %v542_v4  ;;  %v489_v5 = vand.u32 2147483648, %v1303_v8  ;;  %vm498_vm6 = vcmp.eq.f32.partialorder %v1305_v10, inf  ;;  %v900_v9 = vpop.eup %899 }
  0x7e   : > { %v458_v1 = vsub.f32 %v456_v19, %v455_v59  ;;  %v496_v6 = vmul.f32 %v892_v38, %v495_v63  ;;  %v532_v7 = vmul.f32 0.5, %v531_v0  ;;  %vm500_vm7 = vcmp.eq.f32.partialorder %v1305_v10, 0.0  ;;  %v902_v15 = vpop.eup %901 }
  0x7f   : > { %v485_v13 = vmul.f32 %v484_v2, %v1303_v8  ;;  %v501_v16 = vand.u32 2147483648, %v1305_v10  ;;  %v544_v11 = vmul.f32 0.5, %v543_v3  ;;  %v459_v20 = vmul.f32 1.442695, %v457_v33  ;;  %v577_v2 = vld [vmem:[%s1109_s6] sm:$0xff]  ;;  %v765_v3 = vld [vmem:[%s1109_s6 + $0x10] sm:$0xff] }
  0x80   : > { %v497_v12 = vmul.f32 %v496_v6, %v1305_v10  ;;  %v533_v14 = vsub.f32 1.5, %v532_v7  ;;  %vm536_vm8 = vcmp.eq.f32.partialorder %v1315_v22, inf  ;;  %v461_v17 = vmul.f32 1.442695, %v458_v1  ;;  %v578_v7 = vld [vmem:[%s1109_s6 + $0x8] sm:$0xff] }
  0x81   : > { %v487_v47 = vsel %vm486_vm4, %v1303_v8, %v485_v13  ;;  %vm538_vm9 = vcmp.eq.f32.partialorder %v1315_v22, 0.0  ;;  %v545_v18 = vsub.f32 1.5, %v544_v11  ;;  %v539_v26 = vand.u32 2147483648, %v1315_v22  ;;  %v769_v11 = vld [vmem:[%s1109_s6 + $0x20] sm:$0xff] }
  0x82   : > { %v490_v19 = vsel %vm488_vm5, %v489_v5, %v487_v47  ;;  %v499_v21 = vsel %vm498_vm6, %v1305_v10, %v497_v12  ;;  %v534_v25 = vmul.f32 %v896_v54, %v533_v14  ;;  %vm548_vm10 = vcmp.eq.f32.partialorder %v1317_v23, inf  ;;  %v770_v14 = vld [vmem:[%s1109_s6 + $0x28] sm:$0xff] }
  0x83   : > { %v502_v28 = vsel %vm500_vm7, %v501_v16, %v499_v21  ;;  %v504_v29 = vmul.f32 %v503_v57, %v490_v19  ;;  %v546_v42 = vmul.f32 %v898_v58, %v545_v18  ;;  %903 = vpow2.f32 %v459_v20 }
  0x84   : > { %v505_v30 = vmul.f32 %v503_v57, %v502_v28  ;;  %v535_v8 = vmul.f32 %v534_v25, %v1315_v22  ;;  %v551_v34 = vand.u32 2147483648, %v1317_v23  ;;  %905 = vpow2.f32 %v461_v17 }
  0x85   : > { %v507_v36 = vsub.f32 %v506_v35, %v504_v29  ;;  %v547_v38 = vmul.f32 %v546_v42, %v1317_v23  ;;  %vm550_vm11 = vcmp.eq.f32.partialorder %v1317_v23, 0.0  ;;  %v364_v10 = vmax.f32 %v314_v31, %v1341_v46 }
  0x86   : > { %v508_v40 = vsub.f32 %v506_v35, %v505_v30  ;;  %v537_v27 = vsel %vm536_vm8, %v1315_v22, %v535_v8  ;;  %v556_v45 = vstv %s1360_s27  ;;  %v413_v32 = vmax.f32 %v1345_v51, %v900_v9  ;;  %v766_v9 = vld [vmem:[%s1109_s6 + $0x18] sm:$0xff] }
  0x87   : > { %v509_v41 = vmul.f32 1.442695, %v507_v36  ;;  %v540_v43 = vsel %vm538_vm9, %v539_v26, %v537_v27  ;;  %v549_v44 = vsel %vm548_vm10, %v1317_v23, %v547_v38  ;;  %v414_v46 = vmax.f32 %v364_v10, %v902_v15 }
  0x88   : > { %v511_v48 = vmul.f32 1.442695, %v508_v40  ;;  %v552_v49 = vsel %vm550_vm11, %v551_v34, %v549_v44  ;;  %v554_v50 = vmul.f32 %v553_v62, %v540_v43  ;;  %v566_v60 = vstv %s565_s29 }
  0x89   : > { %907 = vpow2.f32 %v509_v41  ;;  %v555_v37 = vmul.f32 %v553_v62, %v552_v49  ;;  %v904_v24 = vpop.eup %903 }
  0x8a   : > { %909 = vpow2.f32 %v511_v48  ;;  %v557_v31 = vsub.f32 %v556_v45, %v554_v50  ;;  %v906_v52 = vpop.eup %905  ;;  %v463_v22 = vmax.f32 %v413_v32, %v904_v24 }
  0x8b   : > { %v558_v53 = vsub.f32 %v556_v45, %v555_v37  ;;  %v464_v56 = vmax.f32 %v414_v46, %v906_v52 }
  0x8c   : > { %v559_v54 = vmul.f32 1.442695, %v557_v31 }
  0x8d   : > { %v561_v55 = vmul.f32 1.442695, %v558_v53 }
  0x8e   : > { %911 = vpow2.f32 %v559_v54 }
  0x8f   : > { %v908_v23 = vpop.eup %907  ;;  %913 = vpow2.f32 %v561_v55 }
  0x90   : > { %v910_v57 = vpop.eup %909  ;;  %v513_v51 = vmax.f32 %v463_v22, %v908_v23 }
  0x91   : > { %v514_v58 = vmax.f32 %v464_v56, %v910_v57 }
  0x94   : > { %v912_v59 = vpop.eup %911 }
  0x95   : > { %v914_v35 = vpop.eup %913  ;;  %v563_v61 = vmax.f32 %v513_v51, %v912_v59 }
  0x96   : > { %v564_v39 = vmax.f32 %v514_v58, %v914_v35 }
  0x97   : > { %v567_v4 = vmul.f32 %v566_v60, %v563_v61 }
  0x98   : > { %v568_v62 = vmul.f32 %v566_v60, %v564_v39 }
  0x99   : > { %v569_v33 = vmul.f32 0.2, %v567_v4  ;;  %v573_v63 = vmul.f32 0.5, %v567_v4 }
  0x9a   : > { %v570_v0 = vmul.f32 0.2, %v568_v62  ;;  %v574_v1 = vmul.f32 0.5, %v568_v62 }
  0x9b   : > { %v571_v5 = vsub.f32 1.0, %v569_v33  ;;  %v575_v6 = vsub.f32 1.0, %v573_v63 }
  0x9c   : > { %v572_v13 = vsub.f32 1.0, %v570_v0  ;;  %v576_v16 = vsub.f32 1.0, %v574_v1 }
  0x9d   : > { %v579_v20 = vmul.f32 %v577_v2, %v571_v5  ;;  %v586_v12 = vmul.f32 %v765_v3, %v575_v6  ;;  %v594_v47 = vmul.f32 %v769_v11, %v575_v6 }
  0x9e   : > { %v580_v15 = vmul.f32 %v578_v7, %v572_v13  ;;  %v587_v17 = vmul.f32 %v766_v9, %v576_v16  ;;  %v595_v18 = vmul.f32 %v770_v14, %v576_v16 }
  0x9f   : > { %581 = vst [vmem:[%s202_s30] sm:$0xff] %v579_v20 }
  0xa0   : > { %582 = vst [vmem:[%s202_s30 + $0x8] sm:$0xff] %v580_v15 }
  0xa1   : > { %767 = vst [vmem:[%s202_s30 + $0x10] sm:$0xff] %v586_v12 }
  0xa2   : > { %768 = vst [vmem:[%s202_s30 + $0x18] sm:$0xff] %v587_v17 }
  0xa3   : > { %771 = vst [vmem:[%s202_s30 + $0x20] sm:$0xff] %v594_v47 }
  0xa4   : > { %772 = vst [vmem:[%s202_s30 + $0x28] sm:$0xff] %v595_v18 }
  0xa5   : > { %s611_s28 = scalar_lea.hbm %s1440_s2, %s733_s23  ;;  %s622_s6 = sshll.u32 %s202_s30, 4  ;;  %s623_s6 = int_to_ptr.vmem [resolvable:$true] %s622_s6 }
  0xa6   : > { %s624_s7 = sshll.u32 %s611_s28, 4  ;;  %s981_s8 = smov 256   ;;  %s625_s7 = int_to_ptr.hbm [resolvable:$true] %s624_s7 }
  0xa7   : > { %794 = sst [smem:[#allocation11]] (%p1055_p11), %s981_s8  ;;  %s982_s5 = smov 1024  }
  0xa8   : > { %795 = sst [smem:[#allocation11 + $0x1]] (%p1055_p11), %s982_s5  ;;  %s983_s13 = smov 2  }
  0xa9   : > { %796 = sst [smem:[#allocation11 + $0x2]] (%p1055_p11), %s983_s13  ;;  %s984_s14 = smov 128  }
  0xaa   : > { %797 = sst [smem:[#allocation11 + $0x3]] (%p1055_p11), %s984_s14  ;;  %s985_s23 = smov 8  }
  0xab   : > { %798 = sst [smem:[#allocation11 + $0x4]] (%p1055_p11), %s984_s14  ;;  %s986_s16 = smov [#allocation10]  }
  0xac   : > { %799 = sst [smem:[#allocation11 + $0x5]] (%p1055_p11), %s985_s23  ;;  %s987_s20 = smov 0  }
  0xad   : > { %800 = dma.general (%p1055_p11), %s623_s6, 768, %s625_s7, %s600_s3, %s986_s16, [#allocation11], %s987_s20, 0  }
  0xae PF: > { %p812_p3 = scmp.ge.s32.totalorder %s972_s12, 2  ;;  %s652_s17 = sand.u32 1, %s960_s9  }
  0xaf   : > { %s653_s24 = scalar_lea.sflag [#allocation4], %s652_s17 }
  0xb0   : > { %p807_p4 = pnand %p812_p3, %p1059_p12 }
  0xb2   : > { %p808_p5 = pneg %p807_p4 }
  0xb4   : > { %955 = dma.done.wait (%p808_p5), %s653_s24, 768  }
  0xb5   : > { %957 = vsyncadd (%p808_p5), %s653_s24, 4294966528  ;;  %p16_p6 = scmp.ge.s32.totalorder %s1028_s15, 6   ;;  %s1446_s9 = smov %s964_s10 }
  0xb6   : > { %s1447_s10 = smov %s968_s11  ;;  %s1448_s11 = smov %s1040_s18 }
  0xb7   : > { %s1449_s12 = smov %s1028_s15  ;;  %18 = sbr.rel (!%p16_p6) target bundleno = 6 (0x6), region = 92 }
  0xbc   :  { %659 = vsyncpa [#allocation3], 1 }
  0xbd   :  { %661 = vsyncpa [#allocation3 + $0x1], 1 }
  0xbe   :  { %662 = vsyncpa [#allocation4], 1 }
  0xbf   :  { %664 = vsyncpa [#allocation4 + $0x1], 1 }
  0xc0   :  { %665 = vsyncpa [#allocation5], 1 }
  0xc1   :  { %667 = vsyncpa [#allocation5 + $0x1], 1 }

</bundles_post_ra>
